<compile_context>
chip_gen: v5e
topology: v5e:2x2
jax: 0.10.0
libtpu: 0.0.40
codegen_flags: <defaults>
</compile_context>

<pallas_src>
import functools

import jax
import jax.numpy as jnp
from jax.experimental import pallas as pl
from jax.experimental.pallas import tpu as pltpu


def _round_up(a, b):
    return (a + b - 1) // b * b


def _causal_conv1d_kernel(*refs, kernel_size, dilation, padding, tile_l,
                          use_carry, use_mxu):
    if use_carry:
        x_ref, w_ref, b_ref, o_ref, carry_ref = refs
    else:
        x_ref, w_ref, b_ref, o_ref = refs

    x_cur = x_ref[0]                            # (C_in, TILE_L); time on lanes
    c_in = x_cur.shape[0]
    c_out = o_ref.shape[1]

    # Causal left halo fused into the kernel (no physically padded copy of x).
    if padding > 0:
        if use_carry:
            # Carry scratch holds the last `padding` columns of the previous
            # time tile of this batch; zero it on the first tile of each batch.
            @pl.when(pl.program_id(1) == 0)
            def _():
                carry_ref[...] = jnp.zeros_like(carry_ref)
            halo = carry_ref[...]               # (C_in, padding)
        else:
            halo = jnp.zeros((c_in, padding), x_cur.dtype)
        x_ext = jnp.concatenate([halo, x_cur], axis=-1)   # (C_in, pad+TILE_L)
    else:
        x_ext = x_cur

    acc = jnp.zeros((c_out, tile_l), jnp.float32)         # small per-tile acc
    for k in range(kernel_size):
        # Tap k: statically lane-shifted window of the extended tile.
        xk = x_ext[:, k * dilation:k * dilation + tile_l].astype(jnp.float32)
        if use_mxu:
            wk = w_ref[k].astype(jnp.float32)              # (C_out, C_in)
            acc += jnp.dot(wk, xk, preferred_element_type=jnp.float32)
        else:
            # Tiny channels: VPU broadcast multiply-adds; MXU stays idle.
            for ci in range(c_in):
                w_col = w_ref[k, :, ci:ci + 1].astype(jnp.float32)  # (C_out, 1)
                acc += w_col * xk[ci:ci + 1, :]
    acc = acc + b_ref[...].astype(jnp.float32)             # (C_out, 1) bcast
    o_ref[0] = acc.astype(o_ref.dtype)

    if use_carry:
        # Save this tile's tail as the next tile's causal halo.
        carry_ref[...] = x_cur[:, tile_l - padding:]


def causal_conv1d(x_ncl, weight_ock, bias_o, *, dilation, A, target_tile_l=2048):
    """x_ncl: (B, C_in, L), weight_ock: (C_out, C_in, K), bias_o: (C_out,).

    Returns (B, C_out, L), matching CausalConv1d.forward.
    """
    B, C_in, L = x_ncl.shape
    C_out, _, K = weight_ock.shape
    padding = (K - 1) * dilation + (1 if A else 0)
    itemsize = jnp.dtype(x_ncl.dtype).itemsize

    # Keep double-buffered in+out tiles comfortably inside VMEM (works on the
    # v7x 64 MiB budget too); otherwise take the biggest tile we can.
    budget_bytes = 8 * 1024 * 1024
    cap = max(128, (budget_bytes // ((C_in + C_out) * itemsize * 2)) // 128 * 128)
    target = min(target_tile_l, cap)

    # Time-axis tiling: one full-length tile for short sequences, otherwise
    # 128-aligned tiles at least as wide as the causal halo.
    if L <= target:
        tile_l = L
    else:
        tile_l = max(_round_up(target, 128), _round_up(padding, 128))
    nt = pl.cdiv(L, tile_l)
    l_pad = nt * tile_l
    x_in = x_ncl if l_pad == L else jnp.pad(
        x_ncl, ((0, 0), (0, 0), (0, l_pad - L)))

    # Weights as (K, C_out, C_in): per-tap matrices / per-(tap, ci) columns.
    w_koc = jnp.transpose(weight_ock, (2, 0, 1))
    b_2d = bias_o.reshape(C_out, 1)

    use_carry = (nt > 1) and (padding > 0)
    if use_carry:
        assert padding <= tile_l, "halo wider than one tile"
    use_mxu = not (C_in <= 16 and C_out <= 16)

    in_specs = [
        pl.BlockSpec((1, C_in, tile_l), lambda b, j: (b, 0, j)),
        pl.BlockSpec((K, C_out, C_in), lambda b, j: (0, 0, 0)),
        pl.BlockSpec((C_out, 1), lambda b, j: (0, 0)),
    ]
    scratch_shapes = []
    if use_carry:
        scratch_shapes.append(pltpu.VMEM((C_in, padding), x_ncl.dtype))

    kern = functools.partial(
        _causal_conv1d_kernel, kernel_size=K, dilation=dilation,
        padding=padding, tile_l=tile_l, use_carry=use_carry, use_mxu=use_mxu)

    y = pl.pallas_call(
        kern,
        out_shape=jax.ShapeDtypeStruct((B, C_out, l_pad), x_ncl.dtype),
        grid=(B, nt),
        in_specs=in_specs,
        out_specs=pl.BlockSpec((1, C_out, tile_l), lambda b, j: (b, 0, j)),
        scratch_shapes=scratch_shapes,
        compiler_params=pltpu.CompilerParams(
            dimension_semantics=("parallel",
                                 "arbitrary" if use_carry else "parallel"),
            vmem_limit_bytes=32 * 1024 * 1024),
    )(x_in, w_koc, b_2d)

    return y if l_pad == L else y[:, :, :L]


def _reference(x_ncl, weight_ock, bias_o, *, dilation, A):
    """Pure-JAX reference mirroring the PyTorch module."""
    K = weight_ock.shape[-1]
    padding = (K - 1) * dilation + (1 if A else 0)
    x_pad = jnp.pad(x_ncl, ((0, 0), (0, 0), (padding, 0)))
    y = jax.lax.conv_general_dilated(
        x_pad, weight_ock, window_strides=(1,), padding="VALID",
        rhs_dilation=(dilation,),
        dimension_numbers=("NCH", "OIH", "NCH"),
        precision=jax.lax.Precision.HIGHEST)
    y = y + bias_o[None, :, None]
    if A:
        y = y[:, :, :-1]
    return y


def _run_case(key, *, B, C_in, C_out, L, K, dilation, A, target_tile_l=2048):
    kx, kw, kb = jax.random.split(key, 3)
    x = jax.random.normal(kx, (B, C_in, L), dtype=jnp.float32)
    bound = 1.0 / jnp.sqrt(jnp.float32(C_in * K))
    w = jax.random.uniform(kw, (C_out, C_in, K), jnp.float32, -bound, bound)
    b = jax.random.uniform(kb, (C_out,), jnp.float32, -bound, bound)

    y = jax.block_until_ready(
        causal_conv1d(x, w, b, dilation=dilation, A=A,
                      target_tile_l=target_tile_l))
    y_ref = _reference(x, w, b, dilation=dilation, A=A)
    assert y.shape == (B, C_out, L), y.shape
    err = jnp.max(jnp.abs(y - y_ref))
    assert jnp.allclose(y, y_ref, atol=2e-5, rtol=2e-5), f"max abs err {err}"


if __name__ == "__main__":
    key = jax.random.PRNGKey(0)
    k1, k2, k3, k4 = jax.random.split(key, 4)

    # Module-sized case: single L tile, in-kernel zero halo, VPU broadcast-MAC.
    _run_case(k1, B=2, C_in=4, C_out=8, L=16, K=3, dilation=2, A=True)
    # Long sequence, small channels: multi-tile grid with VMEM carry halo.
    _run_case(k2, B=2, C_in=4, C_out=8, L=1280, K=3, dilation=3, A=False,
              target_tile_l=512)
    # Wider channels: per-tap MXU dot path, single tile.
    _run_case(k3, B=2, C_in=32, C_out=64, L=256, K=3, dilation=1, A=True)
    # Wider channels + long sequence: MXU path with multi-tile carry halo.
    _run_case(k4, B=2, C_in=32, C_out=64, L=4096, K=5, dilation=2, A=True,
              target_tile_l=1024)

    print("KERNEL_OK")
</pallas_src>

<mosaic_0001>
module attributes {stable_mosaic.version = 11 : i64} {
  func.func @_causal_conv1d_kernel(%arg0: i32, %arg1: i32, %arg2: memref<1x4x16xf32, #tpu.memory_space<vmem>>, %arg3: memref<3x8x4xf32, #tpu.memory_space<vmem>>, %arg4: memref<8x1xf32, #tpu.memory_space<vmem>>, %arg5: memref<1x8x16xf32, #tpu.memory_space<vmem>>) attributes {dimension_semantics = [#tpu.dimension_semantics<parallel>, #tpu.dimension_semantics<parallel>], iteration_bounds = array<i64: 2, 1>, scalar_prefetch = 0 : i64, scratch_operands = 0 : i64, tpu.core_type = #tpu.core_type<tc>, window_params = [{transform_indices = @transform_0, window_bounds = array<i64: 1, 4, 16>}, {pipeline_mode = #tpu.pipeline_mode<synchronous>, transform_indices = @transform_1, window_bounds = array<i64: 3, 8, 4>}, {pipeline_mode = #tpu.pipeline_mode<synchronous>, transform_indices = @transform_2, window_bounds = array<i64: 8, 1>}, {transform_indices = @transform_3, window_bounds = array<i64: 1, 8, 16>}]} {
    %c0 = arith.constant 0 : index
    %c0_0 = arith.constant 0 : index
    %c0_1 = arith.constant 0 : index
    %0 = vector.load %arg2[%c0, %c0_0, %c0_1] : memref<1x4x16xf32, #tpu.memory_space<vmem>>, vector<1x4x16xf32>
    %1 = vector.shape_cast %0 : vector<1x4x16xf32> to vector<4x16xf32>
    %cst = arith.constant 0.000000e+00 : f32
    %2 = vector.broadcast %cst : f32 to vector<4x5xf32>
    %3 = tpu.concatenate %2, %1 in 1 : vector<4x5xf32>, vector<4x16xf32> -> vector<4x21xf32>
    %cst_2 = arith.constant 0.000000e+00 : f32
    %4 = vector.broadcast %cst_2 : f32 to vector<8x16xf32>
    %5 = vector.extract_strided_slice %3 {offsets = [0, 0], sizes = [4, 16], strides = [1, 1]} : vector<4x21xf32> to vector<4x16xf32>
    %c0_3 = arith.constant 0 : index
    %c0_4 = arith.constant 0 : index
    %c0_5 = arith.constant 0 : index
    %6 = vector.load %arg3[%c0_3, %c0_4, %c0_5] : memref<3x8x4xf32, #tpu.memory_space<vmem>>, vector<1x8x1xf32>
    %7 = vector.shape_cast %6 : vector<1x8x1xf32> to vector<8x1xf32>
    %8 = vector.extract_strided_slice %5 {offsets = [0, 0], sizes = [1, 16], strides = [1, 1]} : vector<4x16xf32> to vector<1x16xf32>
    %9 = vector.broadcast %7 : vector<8x1xf32> to vector<8x16xf32>
    %10 = vector.broadcast %8 : vector<1x16xf32> to vector<8x16xf32>
    %11 = arith.mulf %9, %10 : vector<8x16xf32>
    %12 = arith.addf %4, %11 : vector<8x16xf32>
    %c0_6 = arith.constant 0 : index
    %c0_7 = arith.constant 0 : index
    %c1 = arith.constant 1 : index
    %13 = vector.load %arg3[%c0_6, %c0_7, %c1] : memref<3x8x4xf32, #tpu.memory_space<vmem>>, vector<1x8x1xf32>
    %14 = vector.shape_cast %13 : vector<1x8x1xf32> to vector<8x1xf32>
    %15 = vector.extract_strided_slice %5 {offsets = [1, 0], sizes = [1, 16], strides = [1, 1]} : vector<4x16xf32> to vector<1x16xf32>
    %16 = vector.broadcast %14 : vector<8x1xf32> to vector<8x16xf32>
    %17 = vector.broadcast %15 : vector<1x16xf32> to vector<8x16xf32>
    %18 = arith.mulf %16, %17 : vector<8x16xf32>
    %19 = arith.addf %12, %18 : vector<8x16xf32>
    %c0_8 = arith.constant 0 : index
    %c0_9 = arith.constant 0 : index
    %c2 = arith.constant 2 : index
    %20 = vector.load %arg3[%c0_8, %c0_9, %c2] : memref<3x8x4xf32, #tpu.memory_space<vmem>>, vector<1x8x1xf32>
    %21 = vector.shape_cast %20 : vector<1x8x1xf32> to vector<8x1xf32>
    %22 = vector.extract_strided_slice %5 {offsets = [2, 0], sizes = [1, 16], strides = [1, 1]} : vector<4x16xf32> to vector<1x16xf32>
    %23 = vector.broadcast %21 : vector<8x1xf32> to vector<8x16xf32>
    %24 = vector.broadcast %22 : vector<1x16xf32> to vector<8x16xf32>
    %25 = arith.mulf %23, %24 : vector<8x16xf32>
    %26 = arith.addf %19, %25 : vector<8x16xf32>
    %c0_10 = arith.constant 0 : index
    %c0_11 = arith.constant 0 : index
    %c3 = arith.constant 3 : index
    %27 = vector.load %arg3[%c0_10, %c0_11, %c3] : memref<3x8x4xf32, #tpu.memory_space<vmem>>, vector<1x8x1xf32>
    %28 = vector.shape_cast %27 : vector<1x8x1xf32> to vector<8x1xf32>
    %29 = vector.extract_strided_slice %5 {offsets = [3, 0], sizes = [1, 16], strides = [1, 1]} : vector<4x16xf32> to vector<1x16xf32>
    %30 = vector.broadcast %28 : vector<8x1xf32> to vector<8x16xf32>
    %31 = vector.broadcast %29 : vector<1x16xf32> to vector<8x16xf32>
    %32 = arith.mulf %30, %31 : vector<8x16xf32>
    %33 = arith.addf %26, %32 : vector<8x16xf32>
    %34 = vector.extract_strided_slice %3 {offsets = [0, 2], sizes = [4, 16], strides = [1, 1]} : vector<4x21xf32> to vector<4x16xf32>
    %c1_12 = arith.constant 1 : index
    %c0_13 = arith.constant 0 : index
    %c0_14 = arith.constant 0 : index
    %35 = vector.load %arg3[%c1_12, %c0_13, %c0_14] : memref<3x8x4xf32, #tpu.memory_space<vmem>>, vector<1x8x1xf32>
    %36 = vector.shape_cast %35 : vector<1x8x1xf32> to vector<8x1xf32>
    %37 = vector.extract_strided_slice %34 {offsets = [0, 0], sizes = [1, 16], strides = [1, 1]} : vector<4x16xf32> to vector<1x16xf32>
    %38 = vector.broadcast %36 : vector<8x1xf32> to vector<8x16xf32>
    %39 = vector.broadcast %37 : vector<1x16xf32> to vector<8x16xf32>
    %40 = arith.mulf %38, %39 : vector<8x16xf32>
    %41 = arith.addf %33, %40 : vector<8x16xf32>
    %c1_15 = arith.constant 1 : index
    %c0_16 = arith.constant 0 : index
    %c1_17 = arith.constant 1 : index
    %42 = vector.load %arg3[%c1_15, %c0_16, %c1_17] : memref<3x8x4xf32, #tpu.memory_space<vmem>>, vector<1x8x1xf32>
    %43 = vector.shape_cast %42 : vector<1x8x1xf32> to vector<8x1xf32>
    %44 = vector.extract_strided_slice %34 {offsets = [1, 0], sizes = [1, 16], strides = [1, 1]} : vector<4x16xf32> to vector<1x16xf32>
    %45 = vector.broadcast %43 : vector<8x1xf32> to vector<8x16xf32>
    %46 = vector.broadcast %44 : vector<1x16xf32> to vector<8x16xf32>
    %47 = arith.mulf %45, %46 : vector<8x16xf32>
    %48 = arith.addf %41, %47 : vector<8x16xf32>
    %c1_18 = arith.constant 1 : index
    %c0_19 = arith.constant 0 : index
    %c2_20 = arith.constant 2 : index
    %49 = vector.load %arg3[%c1_18, %c0_19, %c2_20] : memref<3x8x4xf32, #tpu.memory_space<vmem>>, vector<1x8x1xf32>
    %50 = vector.shape_cast %49 : vector<1x8x1xf32> to vector<8x1xf32>
    %51 = vector.extract_strided_slice %34 {offsets = [2, 0], sizes = [1, 16], strides = [1, 1]} : vector<4x16xf32> to vector<1x16xf32>
    %52 = vector.broadcast %50 : vector<8x1xf32> to vector<8x16xf32>
    %53 = vector.broadcast %51 : vector<1x16xf32> to vector<8x16xf32>
    %54 = arith.mulf %52, %53 : vector<8x16xf32>
    %55 = arith.addf %48, %54 : vector<8x16xf32>
    %c1_21 = arith.constant 1 : index
    %c0_22 = arith.constant 0 : index
    %c3_23 = arith.constant 3 : index
    %56 = vector.load %arg3[%c1_21, %c0_22, %c3_23] : memref<3x8x4xf32, #tpu.memory_space<vmem>>, vector<1x8x1xf32>
    %57 = vector.shape_cast %56 : vector<1x8x1xf32> to vector<8x1xf32>
    %58 = vector.extract_strided_slice %34 {offsets = [3, 0], sizes = [1, 16], strides = [1, 1]} : vector<4x16xf32> to vector<1x16xf32>
    %59 = vector.broadcast %57 : vector<8x1xf32> to vector<8x16xf32>
    %60 = vector.broadcast %58 : vector<1x16xf32> to vector<8x16xf32>
    %61 = arith.mulf %59, %60 : vector<8x16xf32>
    %62 = arith.addf %55, %61 : vector<8x16xf32>
    %63 = vector.extract_strided_slice %3 {offsets = [0, 4], sizes = [4, 16], strides = [1, 1]} : vector<4x21xf32> to vector<4x16xf32>
    %c2_24 = arith.constant 2 : index
    %c0_25 = arith.constant 0 : index
    %c0_26 = arith.constant 0 : index
    %64 = vector.load %arg3[%c2_24, %c0_25, %c0_26] : memref<3x8x4xf32, #tpu.memory_space<vmem>>, vector<1x8x1xf32>
    %65 = vector.shape_cast %64 : vector<1x8x1xf32> to vector<8x1xf32>
    %66 = vector.extract_strided_slice %63 {offsets = [0, 0], sizes = [1, 16], strides = [1, 1]} : vector<4x16xf32> to vector<1x16xf32>
    %67 = vector.broadcast %65 : vector<8x1xf32> to vector<8x16xf32>
    %68 = vector.broadcast %66 : vector<1x16xf32> to vector<8x16xf32>
    %69 = arith.mulf %67, %68 : vector<8x16xf32>
    %70 = arith.addf %62, %69 : vector<8x16xf32>
    %c2_27 = arith.constant 2 : index
    %c0_28 = arith.constant 0 : index
    %c1_29 = arith.constant 1 : index
    %71 = vector.load %arg3[%c2_27, %c0_28, %c1_29] : memref<3x8x4xf32, #tpu.memory_space<vmem>>, vector<1x8x1xf32>
    %72 = vector.shape_cast %71 : vector<1x8x1xf32> to vector<8x1xf32>
    %73 = vector.extract_strided_slice %63 {offsets = [1, 0], sizes = [1, 16], strides = [1, 1]} : vector<4x16xf32> to vector<1x16xf32>
    %74 = vector.broadcast %72 : vector<8x1xf32> to vector<8x16xf32>
    %75 = vector.broadcast %73 : vector<1x16xf32> to vector<8x16xf32>
    %76 = arith.mulf %74, %75 : vector<8x16xf32>
    %77 = arith.addf %70, %76 : vector<8x16xf32>
    %c2_30 = arith.constant 2 : index
    %c0_31 = arith.constant 0 : index
    %c2_32 = arith.constant 2 : index
    %78 = vector.load %arg3[%c2_30, %c0_31, %c2_32] : memref<3x8x4xf32, #tpu.memory_space<vmem>>, vector<1x8x1xf32>
    %79 = vector.shape_cast %78 : vector<1x8x1xf32> to vector<8x1xf32>
    %80 = vector.extract_strided_slice %63 {offsets = [2, 0], sizes = [1, 16], strides = [1, 1]} : vector<4x16xf32> to vector<1x16xf32>
    %81 = vector.broadcast %79 : vector<8x1xf32> to vector<8x16xf32>
    %82 = vector.broadcast %80 : vector<1x16xf32> to vector<8x16xf32>
    %83 = arith.mulf %81, %82 : vector<8x16xf32>
    %84 = arith.addf %77, %83 : vector<8x16xf32>
    %c2_33 = arith.constant 2 : index
    %c0_34 = arith.constant 0 : index
    %c3_35 = arith.constant 3 : index
    %85 = vector.load %arg3[%c2_33, %c0_34, %c3_35] : memref<3x8x4xf32, #tpu.memory_space<vmem>>, vector<1x8x1xf32>
    %86 = vector.shape_cast %85 : vector<1x8x1xf32> to vector<8x1xf32>
    %87 = vector.extract_strided_slice %63 {offsets = [3, 0], sizes = [1, 16], strides = [1, 1]} : vector<4x16xf32> to vector<1x16xf32>
    %88 = vector.broadcast %86 : vector<8x1xf32> to vector<8x16xf32>
    %89 = vector.broadcast %87 : vector<1x16xf32> to vector<8x16xf32>
    %90 = arith.mulf %88, %89 : vector<8x16xf32>
    %91 = arith.addf %84, %90 : vector<8x16xf32>
    %c0_36 = arith.constant 0 : index
    %c0_37 = arith.constant 0 : index
    %92 = vector.load %arg4[%c0_36, %c0_37] : memref<8x1xf32, #tpu.memory_space<vmem>>, vector<8x1xf32>
    %93 = vector.broadcast %92 : vector<8x1xf32> to vector<8x16xf32>
    %94 = arith.addf %91, %93 : vector<8x16xf32>
    %c0_38 = arith.constant 0 : index
    %c0_39 = arith.constant 0 : index
    %c0_40 = arith.constant 0 : index
    %95 = vector.load %arg5[%c0_38, %c0_39, %c0_40] : memref<1x8x16xf32, #tpu.memory_space<vmem>>, vector<1x8x16xf32>
    %96 = vector.shape_cast %95 : vector<1x8x16xf32> to vector<8x16xf32>
    %97 = vector.shape_cast %94 : vector<8x16xf32> to vector<1x8x16xf32>
    tpu.vector_store %arg5[%c0_38, %c0_39, %c0_40], %97 {strides = array<i32>} : memref<1x8x16xf32, #tpu.memory_space<vmem>>, vector<1x8x16xf32>,
    return
  }
  func.func @transform_0(%arg0: i32, %arg1: i32) -> (i32, i32, i32) {
    %c0_i32 = arith.constant 0 : i32
    %c0_i32_0 = arith.constant 0 : i32
    return %arg0, %c0_i32, %arg1 : i32, i32, i32
  }
  func.func @transform_1(%arg0: i32, %arg1: i32) -> (i32, i32, i32) {
    %c0_i32 = arith.constant 0 : i32
    %c0_i32_0 = arith.constant 0 : i32
    %c0_i32_1 = arith.constant 0 : i32
    %c0_i32_2 = arith.constant 0 : i32
    return %c0_i32, %c0_i32_0, %c0_i32_1 : i32, i32, i32
  }
  func.func @transform_2(%arg0: i32, %arg1: i32) -> (i32, i32) {
    %c0_i32 = arith.constant 0 : i32
    %c0_i32_0 = arith.constant 0 : i32
    %c0_i32_1 = arith.constant 0 : i32
    return %c0_i32, %c0_i32_0 : i32, i32
  }
  func.func @transform_3(%arg0: i32, %arg1: i32) -> (i32, i32, i32) {
    %c0_i32 = arith.constant 0 : i32
    %c0_i32_0 = arith.constant 0 : i32
    return %arg0, %c0_i32, %arg1 : i32, i32, i32
  }
}

</mosaic_0001>

<bundles_post_ra>
// kernel: tpu_custom_call.1
= control target key start
LH: loop header
LB: loop body
LE: loop exit
PB: predicated region body
PF: predicated region fallthrough
CT: control target
= control target key end

     0   :  { %8 = vsyncpa [#allocation3], 0  ;;  %s715_s0 = inlined_call_operand.vmem [shape: f32[2,4,16], index: 0, kind: input, shape index: {}]   ;;  %s716_s1 = inlined_call_operand.vmem [shape: f32[3,8,4], index: 1, kind: input, shape index: {}]   ;;  %s717_s2 = inlined_call_operand.vmem [shape: f32[8,1], index: 2, kind: input, shape index: {}]   ;;  %s718_s3 = inlined_call_operand.hbm [shape: f32[2,8,16], index: 3, kind: output, shape index: {}]  }
   0x1   :  { %10 = vsyncpa [#allocation3 + $0x1], 0  ;;  %s606_s12 = smov 0   ;;  %s608_s13 = smov 0  }
   0x2   :  { %s610_s14 = smov 0   ;;  %s612_s15 = smov 0  }
   0x3   :  { %s614_s16 = smov 0   ;;  %s616_s17 = smov 0  }
   0x4 LB: > { %s411_s18 = sadd.s32 4294967295, %s577_s17   ;;  %s412_s19 = sadd.s32 4294967294, %s577_s17   ;;  %s577_s17 = sphi %s616_s17, %s16_s17   ;;  %s573_s16 = sphi %s614_s16, %s725_s16   ;;  %s569_s15 = sphi %s612_s15, %s724_s15   ;;  %s565_s14 = sphi %s610_s14, %s723_s14   ;;  %s561_s13 = sphi %s608_s13, %s722_s13   ;;  %s557_s12 = sphi %s606_s12, %s721_s12  }
   0x5   : > { %s28_s20 = sadd.s32 1, %s573_s16  ;;  %s107_s21 = sadd.s32 1, %s565_s14 }
   0x6   : > { %p30_p0 = scmp.ge.s32.totalorder %s28_s20, 2  ;;  %p117_p1 = scmp.ne.s32.totalorder %s565_s14, %s561_s13 }
   0x7   : > { %p118_p2 = scmp.eq.s32.totalorder %s411_s18, 1  ;;  %p123_p3 = scmp.ne.s32.totalorder %s561_s13, %s557_s12 }
   0x8   : > { %s727_s20 = smov (%p30_p0, %s28_s20), 0  ;;  %p124_p5 = scmp.eq.s32.totalorder %s412_s19, 1 }
   0x9   : > { %p646_p4 = por %p118_p2, %p117_p1  ;;  %s102_s23 = ssub.s32 %s573_s16, %s727_s20 }
   0xa   : > { %p415_p6 = scmp.ge.s32.totalorder %s577_s17, 1  ;;  %p105_p7 = scmp.eq.s32.totalorder %s102_s23, 0 }
   0xb   : > { %p653_p8 = por %p124_p5, %p123_p3  ;;  %p158_p9 = scmp.lt.s32.totalorder %s577_s17, 3 }
   0xc   : > { %s659_s25 = scalar_select %p105_p7, %s565_s14, %s107_s21  }
   0xd   : > { %p159_p10 = pnand %p415_p6, %p158_p9 }
   0xe   : > { %p184_p11 = scmp.lt.s32.totalorder (!%p159_p10), %s569_s15, 1  ;;  %s581_s6 = smov (!%p159_p10), 5  }
   0xf   : > { %162 = sbr.rel (%p159_p10) target bundleno = 288 (0x120), region = 32  ;;  %s584_s11 = smov (!%p159_p10), 126  }
  0x10   : > { %s585_s18 = smov (!%p159_p10), 124   ;;  %s181_s23 = sand.u32 (!%p159_p10), 1, %s561_s13  }
  0x11   : > { %s416_s26 = sshll.u32 (!%p159_p10), %s181_s23, 3  ;;  %s421_s27 = sshll.u32 (!%p159_p10), %s569_s15, 3 }
  0x12   : > { %s335_s30 = scalar_lea.hbm (!%p159_p10), %s718_s3, %s421_s27  ;;  %s183_s4 = scalar_lea.vmem (!%p159_p10), [#allocation2], %s416_s26 }
  0x14   : > { %v418_v0 = vld [vmem:[%s716_s1 + $0x8] sm:$0xff]  ;;  %v579_v1 = vmov 2   ;;  %v580_v2 = vmov 0   ;;  %s185_s28 = scalar_select %p184_p11, %s569_s15, 1  ;;  %v582_v4 = vmov 3   ;;  %v583_v5 = vmov 1  }
  0x15   : > { %489 = vset.pattern.permute.xlu2 %v579_v1  ;;  %487 = vset.pattern.permute.xlu1 %v580_v2  ;;  %v198_v6 = vld [vmem:[%s716_s1] sm:$0xff]  ;;  %v419_v7 = vld [vmem:[%s716_s1 + $0x10] sm:$0xff]  ;;  %vm196_vm0 = vcmask 39936   ;;  %vm321_vm1 = vcmask 130048   ;;  %s324_s15 = scalar_lea.sflag [#allocation3], %s181_s23 }
  0x16   : > { %252 = vperm.xlu2 %489, %v418_v0   ;;  %232 = vperm.xlu1 %487, %v418_v0   ;;  %s417_s29 = sshll.u32 %s185_s28, 2  ;;  %v314_v32 = vld [vmem:[%s717_s2] sm:$0xff] }
  0x17   : > { %486 = vset.pattern.permute.xlu0 %v580_v2  ;;  %s190_s5 = scalar_lea.vmem %s715_s0, %s417_s29 }
  0x18   : > { %v191_v3 = vld [vmem:[%s190_s5] sm:$0xf]  ;;  %s337_s5 = sshll.u32 %s183_s4, 4  ;;  %s338_s5 = int_to_ptr.vmem [resolvable:$true] %s337_s5 }
  0x19   : > { %193 = vrot.lane.b32.xlu0 %v191_v3, %s581_s6  ;;  %s339_s6 = sshll.u32 %s335_s30, 4  ;;  %s340_s6 = int_to_ptr.hbm [resolvable:$true] %s339_s6 }
  0x1a   : > { %s513_s7 = sshra.s32 %s340_s6, 4  ;;  %s514_s7 = int_to_ptr.hbm [resolvable:$true] %s513_s7 }
  0x1b   : > { %s515_s8 = scalar_lea.hbm %s514_s7, 8  ;;  %p520_p1 = scmp.lt.s32.totalorder %s514_s7, %s718_s3 }
  0x1c   : > { %p516_p12 = scmp.ne.s32.totalorder %s514_s7, %s515_s8 }
  0x1e   : > { %490 = vset.pattern.permute.xlu2 %v582_v4  ;;  %488 = vset.pattern.permute.xlu1 %v583_v5  ;;  %p517_p13 = pnand %p516_p12, %p646_p4 }
  0x1f   : > { %262 = vperm.xlu2 %490, %v418_v0   ;;  %242 = vperm.xlu1 %488, %v418_v0  }
  0x20   : > { %p518_p0 = pneg %p517_p13 }
  0x21   : > { %201 = vperm.xlu0 %486, %v198_v6  }
  0x27   : > { %492 = vset.pattern.permute.xlu2 %v583_v5  ;;  %491 = vset.pattern.permute.xlu1 %v580_v2 }
  0x28   : > { %285 = vperm.xlu2 %492, %v419_v7   ;;  %275 = vperm.xlu1 %491, %v419_v7  }
  0x29   : > { %493 = vset.pattern.permute.xlu0 %v579_v1 }
  0x2a   : > { %295 = vperm.xlu0 %493, %v419_v7  }
  0x30   : > { %494 = vset.pattern.permute.xlu1 %v582_v4  ;;  %208 = vperm.xlu2 %492, %v198_v6  }
  0x31   : > { %305 = vperm.xlu1 %494, %v419_v7  }
  0x32   : > { %498 = vset.pattern.permute.xlu0 %v580_v2 }
  0x38   : > { %496 = vset.pattern.permute.xlu2 %v582_v4 }
  0x39   : > { %495 = vset.pattern.permute.xlu1 %v579_v1  ;;  %222 = vperm.xlu2 %496, %v198_v6  }
  0x3a   : > { %215 = vperm.xlu1 %495, %v198_v6  }
  0x41   : > { %497 = vset.pattern.permute.xlu2 %v580_v2 }
  0x70   : > { %v253_v8 = vpop.permute.xlu2 %252 }
  0x79   : > { %v263_v9 = vpop.permute.xlu2 %262 }
  0x82   : > { %v286_v11 = vpop.permute.xlu2 %285 }
  0x88   : > { %v233_v10 = vpop.permute.xlu1 %232 }
  0x8a   : > { %v209_v21 = vpop.permute.xlu2 %208 }
  0x8b   : > { %v194_v12 = vpop.permute.xlu0 %193 }
  0x8c   : > { %v197_v13 = vsel %vm196_vm0, 0.0, %v194_v12 }
  0x8d   : > { %v204_v14 = vperm.slane %v197_v13, 0  ;;  %v211_v15 = vperm.slane %v197_v13, 1  ;;  %v218_v16 = vperm.slane %v197_v13, 2  ;;  %v225_v22 = vperm.slane %v197_v13, 3 }
  0x8f   : > { %v255_v18 = vmul.f32 %v253_v8, %v218_v16  ;;  %v235_v19 = vmul.f32 %v233_v10, %v204_v14  ;;  %v212_v24 = vmul.f32 %v211_v15, %v209_v21  ;;  %v288_v27 = vmul.f32 %v286_v11, %v211_v15 }
  0x90   : > { %v265_v28 = vmul.f32 %v263_v9, %v225_v22 }
  0x91   : > { %v243_v17 = vpop.permute.xlu1 %242  ;;  %257 = vrot.lane.b32.xlu2 %v255_v18, %s584_s11  ;;  %237 = vrot.lane.b32.xlu0 %v235_v19, %s584_s11 }
  0x92   : > { %v245_v20 = vmul.f32 %v243_v17, %v211_v15 }
  0x93   : > { %v202_v23 = vpop.permute.xlu0 %201  ;;  %v223_v36 = vpop.permute.xlu2 %222 }
  0x94   : > { %247 = vrot.lane.b32.xlu1 %v245_v20, %s584_s11  ;;  %v205_v25 = vmul.f32 %v204_v14, %v202_v23  ;;  %v226_v39 = vmul.f32 %v225_v22, %v223_v36 }
  0x96   : > { %v213_v26 = vadd.f32 %v212_v24, %v205_v25 }
  0x99   : > { %290 = vrot.lane.b32.xlu2 %v288_v27, %s585_s18  ;;  %267 = vrot.lane.b32.xlu0 %v265_v28, %s584_s11  ;;  %s519_s11 = scalar_lea.hbm %s718_s3, 16 }
  0x9a   : > { %v276_v29 = vpop.permute.xlu1 %275  ;;  %p521_p2 = scmp.lt.s32.totalorder %s519_s11, %s515_s8 }
  0x9b   : > { %v278_v30 = vmul.f32 %v276_v29, %v204_v14 }
  0x9c   : > { %v296_v31 = vpop.permute.xlu0 %295  ;;  %p522_p3 = por %p521_p2, %p520_p1 }
  0x9d   : > { %280 = vrot.lane.b32.xlu1 %v278_v30, %s585_s18  ;;  %v298_v33 = vmul.f32 %v296_v31, %v218_v16 }
  0x9e   : > { %p523_p5 = pnand %p522_p3, %p518_p0 }
  0xa1   : > { %300 = vrot.lane.b32.xlu0 %v298_v33, %s585_s18  ;;  %317 = vperm.xlu2 %497, %v314_v32  }
  0xa3   : > { %v306_v34 = vpop.permute.xlu1 %305 }
  0xa4   : > { %v308_v35 = vmul.f32 %v306_v34, %v225_v22 }
  0xa6   : > { %310 = vrot.lane.b32.xlu1 %v308_v35, %s585_s18 }
  0xac   : > { %v216_v37 = vpop.permute.xlu1 %215 }
  0xad   : > { %v219_v38 = vmul.f32 %v218_v16, %v216_v37 }
  0xaf   : > { %v220_v40 = vadd.f32 %v219_v38, %v213_v26 }
  0xb1   : > { %v227_v41 = vadd.f32 %v226_v39, %v220_v40 }
  0xeb   : > { %v258_v43 = vpop.permute.xlu2 %257 }
  0xf3   : > { %v291_v51 = vpop.permute.xlu2 %290 }
  0xfb   : > { %v318_v57 = vpop.permute.xlu2 %317 }
 0x103   : > { %v238_v42 = vpop.permute.xlu0 %237 }
 0x104   : > { %v240_v44 = vadd.f32 %v238_v42, %v227_v41 }
 0x106   : > { %v248_v45 = vpop.permute.xlu1 %247 }
 0x107   : > { %v250_v46 = vadd.f32 %v248_v45, %v240_v44 }
 0x109   : > { %v260_v47 = vadd.f32 %v258_v43, %v250_v46 }
 0x10b   : > { %v268_v48 = vpop.permute.xlu0 %267 }
 0x10c   : > { %v270_v49 = vadd.f32 %v268_v48, %v260_v47 }
 0x10f   : > { %v281_v50 = vpop.permute.xlu1 %280 }
 0x110   : > { %v283_v52 = vadd.f32 %v281_v50, %v270_v49 }
 0x112   : > { %v293_v53 = vadd.f32 %v291_v51, %v283_v52 }
 0x113   : > { %v301_v54 = vpop.permute.xlu0 %300 }
 0x114   : > { %v303_v55 = vadd.f32 %v301_v54, %v293_v53 }
 0x118   : > { %v311_v56 = vpop.permute.xlu1 %310 }
 0x119   : > { %v313_v58 = vadd.f32 %v311_v56, %v303_v55 }
 0x11b   : > { %v320_v59 = vadd.f32 %v318_v57, %v313_v58 }
 0x11d   : > { %322 = vst.msk [vmem:[%s183_s4] sm:$0xff] %vm321_vm1, %v320_v59 }
 0x11e   : > { %526 = shalt.err (!%p523_p5)
}
 0x11f   : > { %424 = dma.vmem_to_hbm [thread:$0]  (%p646_p4), %s338_s5, 128, %s340_s6, %s324_s15  }
 0x120 PF: > { %p430_p6 = scmp.ge.s32.totalorder %s577_s17, 2  ;;  %s351_s21 = sand.u32 1, %s557_s12  }
 0x121   : > { %s352_s23 = scalar_lea.sflag [#allocation3], %s351_s21 }
 0x122   : > { %p427_p7 = pnand %p430_p6, %p653_p8 }
 0x124   : > { %p428_p9 = pneg %p427_p7 }
 0x126   : > { %552 = dma.done.wait (%p428_p9), %s352_s23, 128  }
 0x127   : > { %554 = vsyncadd (%p428_p9), %s352_s23, 4294967168  ;;  %s16_s17 = sadd.s32 1, %s577_s17   ;;  %s721_s12 = smov %s561_s13 }
 0x128   : > { %p13_p10 = scmp.ge.s32.totalorder %s16_s17, 4   ;;  %s722_s13 = smov %s565_s14 }
 0x129   : > { %s723_s14 = smov %s659_s25  ;;  %s724_s15 = smov %s573_s16 }
 0x12a   : > { %s725_s16 = smov %s727_s20  ;;  %15 = sbr.rel (!%p13_p10) target bundleno = 4 (0x4), region = 69 }
 0x12f   :  { %358 = vsyncpa [#allocation3], 1 }
 0x130   :  { %360 = vsyncpa [#allocation3 + $0x1], 1 }

</bundles_post_ra>
